<compile_context>
chip_gen: v7x
topology: tpu7x:2x2x1
jax: 0.10.0
libtpu: 0.0.40
codegen_flags: <defaults>
</compile_context>

<pallas_src>
import functools

import jax
import jax.numpy as jnp
from jax import lax
from jax.experimental import pallas as pl
from jax.experimental.pallas import tpu as pltpu


def _dsconv_kernel(x_ref, dw_ref, pw_ref, bias_ref, o_ref, *,
                   kh, kw, stride, dilation, h_out, w_out):
    """One grid step processes `block_n` batch elements.

    x_ref    : (block_n, C_in, Hp, Wp)       zero-padded input, NCHW
    dw_ref   : (KH, KW, C_in)                depthwise weights
    pw_ref   : (C_out, C_in)                 pointwise weights
    bias_ref : (C_out, 1)                    fused bias  (pw_w @ dw_b + pw_b), f32
    o_ref    : (block_n, C_out, H_out*W_out) lane-dense output
    """
    block_n = x_ref.shape[0]
    c_in = x_ref.shape[1]
    hp, wp = x_ref.shape[2], x_ref.shape[3]
    c_out = pw_ref.shape[0]
    hw_out = h_out * w_out

    # ---- hoist all (tiny) weight loads once per grid step -------------------
    dw = dw_ref[...]                      # (KH, KW, C_in)
    pw = pw_ref[...]                      # (C_out, C_in)
    bias = bias_ref[...].astype(jnp.float32)   # (C_out, 1)

    if stride == 1:
        h_acc, w_acc = h_out, w_out
    else:
        # Accumulate the full stride-1 output and downsample ONCE at the end
        # (avoids kh*kw strided gathers per step).
        h_acc = hp - dilation * (kh - 1)
        w_acc = wp - dilation * (kw - 1)

    for b in range(block_n):              # static unroll, block_n is small
        # ---- depthwise conv: KH*KW unrolled taps, VPU multiply-accumulate ---
        acc = jnp.zeros((c_in, h_acc, w_acc), jnp.float32)
        for i in range(kh):
            for j in range(kw):
                tap = x_ref[b, :, pl.ds(i * dilation, h_acc),
                            pl.ds(j * dilation, w_acc)]
                acc = acc + tap.astype(jnp.float32) * dw[i, j][:, None, None]

        if stride != 1:
            acc = acc[:, ::stride, ::stride]            # (C_in, H_out, W_out)

        # ---- lane-dense repack (one-time relayout per image) ----------------
        acc2 = acc.reshape(c_in, hw_out)                # (C_in, H_out*W_out)

        # ---- pointwise 1x1 conv: C_in unrolled broadcast-FMAs on the VPU ----
        # out[co, p] = bias[co] + sum_c pw[co, c] * acc2[c, p]
        out = bias                                      # (C_out, 1) broadcasts
        for c in range(c_in):
            out = out + pw[:, c][:, None].astype(jnp.float32) * acc2[c][None, :]

        o_ref[b] = out.astype(o_ref.dtype)              # unmasked, lane-dense


def _default_batch_block(n):
    """Pick the per-grid-step batch block by TPU generation.

    v5e/v6e have a single TensorCore: a batch grid is a purely sequential loop
    that only pays per-step overhead, so collapse it.  v7x has 2 TCs per chip:
    keep a parallel batch axis so both cores get work.  Unknown -> keep axis.
    """
    try:
        kind = jax.devices()[0].device_kind.lower()
    except Exception:
        return 1
    single_tc_tags = ("v5 lite", "v5e", "v5litepod", "v6 lite", "v6e")
    if any(tag in kind for tag in single_tc_tags):
        return n
    return 1


def dsconv_pallas(x_nchw, dw_w, dw_b, pw_w, pw_b, *, stride=1, padding=0,
                  dilation=1, batch_block=None, compute_dtype=None):
    """Depthwise-separable conv matching torch DSConv.forward.

    x_nchw : (N, C_in, H, W)
    dw_w   : (C_in, 1, KH, KW),  dw_b : (C_in,)
    pw_w   : (C_out, C_in, 1, 1), pw_b : (C_out,)
    returns (N, C_out, H_out, W_out)  (NCHW)
    """
    n, c_in, h, w = x_nchw.shape
    kh, kw = dw_w.shape[2], dw_w.shape[3]
    c_out = pw_w.shape[0]
    out_dtype = x_nchw.dtype

    h_out = (h + 2 * padding - dilation * (kh - 1) - 1) // stride + 1
    w_out = (w + 2 * padding - dilation * (kw - 1) - 1) // stride + 1
    hw_out = h_out * w_out
    hp, wp = h + 2 * padding, w + 2 * padding

    # --- tiny O(C * K^2) weight re-packs, done once outside the kernel -------
    dw_k = jnp.transpose(dw_w[:, 0, :, :], (1, 2, 0))            # (KH, KW, C_in)
    pw_k = pw_w[:, :, 0, 0]                                      # (C_out, C_in)
    # Fold the depthwise bias through the pointwise conv (exact algebra):
    #   pw @ (dw_conv + dw_b) + pw_b == pw @ dw_conv + (pw @ dw_b + pw_b)
    bias_k = (pw_b.astype(jnp.float32)
              + pw_k.astype(jnp.float32) @ dw_b.astype(jnp.float32)
              ).reshape(c_out, 1)                                # (C_out, 1) f32

    # Optional bf16 inputs/weights (v6e/v7x); accumulation stays f32 in-kernel.
    if compute_dtype is not None:
        x_nchw = x_nchw.astype(compute_dtype)
        dw_k = dw_k.astype(compute_dtype)
        pw_k = pw_k.astype(compute_dtype)

    # Wrapper-side zero pad: one small HBM pass overlapped by the pipeline;
    # removes the per-step VMEM scratch zero-fill and VMEM->VMEM copy.
    if padding > 0:
        x_pad = jnp.pad(
            x_nchw, ((0, 0), (0, 0), (padding, padding), (padding, padding)))
    else:
        x_pad = x_nchw

    # --- generation-aware batch blocking --------------------------------------
    if batch_block is None:
        batch_block = _default_batch_block(n)
    batch_block = max(1, min(int(batch_block), n))
    while n % batch_block != 0:
        batch_block -= 1
    n_steps = n // batch_block

    kernel = functools.partial(
        _dsconv_kernel, kh=kh, kw=kw, stride=stride, dilation=dilation,
        h_out=h_out, w_out=w_out)

    flops = 2 * n * h_out * w_out * c_in * (kh * kw + c_out)
    itemsize = jnp.dtype(x_pad.dtype).itemsize
    bytes_accessed = (int(x_pad.size) * itemsize
                      + int(dw_k.size) * itemsize
                      + int(pw_k.size) * itemsize
                      + c_out * 4
                      + n * c_out * hw_out * jnp.dtype(out_dtype).itemsize)

    out = pl.pallas_call(
        kernel,
        out_shape=jax.ShapeDtypeStruct((n, c_out, hw_out), out_dtype),
        grid_spec=pltpu.PrefetchScalarGridSpec(
            num_scalar_prefetch=0,
            grid=(n_steps,),
            in_specs=[
                pl.BlockSpec((batch_block, c_in, hp, wp),
                             lambda g: (g, 0, 0, 0)),
                pl.BlockSpec((kh, kw, c_in), lambda g: (0, 0, 0)),
                pl.BlockSpec((c_out, c_in), lambda g: (0, 0)),
                pl.BlockSpec((c_out, 1), lambda g: (0, 0)),
            ],
            out_specs=pl.BlockSpec((batch_block, c_out, hw_out),
                                   lambda g: (g, 0, 0)),
        ),
        compiler_params=pltpu.CompilerParams(
            dimension_semantics=("parallel",)),
        cost_estimate=pl.CostEstimate(
            flops=flops, transcendentals=0, bytes_accessed=bytes_accessed),
    )(x_pad, dw_k, pw_k, bias_k)

    # Free reshape (contiguous) back to NCHW.
    return out.reshape(n, c_out, h_out, w_out)


def dsconv_reference(x_nchw, dw_w, dw_b, pw_w, pw_b, *, stride=1, padding=0,
                     dilation=1):
    """Pure-JAX reference (lax conv) for correctness checking."""
    c_in = x_nchw.shape[1]
    dw = lax.conv_general_dilated(
        x_nchw, dw_w,
        window_strides=(stride, stride),
        padding=((padding, padding), (padding, padding)),
        rhs_dilation=(dilation, dilation),
        dimension_numbers=("NCHW", "OIHW", "NCHW"),
        feature_group_count=c_in,
    ) + dw_b.reshape(1, -1, 1, 1)
    pw = lax.conv_general_dilated(
        dw, pw_w,
        window_strides=(1, 1),
        padding="VALID",
        dimension_numbers=("NCHW", "OIHW", "NCHW"),
    ) + pw_b.reshape(1, -1, 1, 1)
    return pw


if __name__ == "__main__":
    # DSConv(in_channels=4, out_channels=8, kernel_size=3, stride=1, padding=1)
    N, C_IN, H, W = 2, 4, 16, 16
    C_OUT, K = 8, 3
    STRIDE, PADDING, DILATION = 1, 1, 1

    key = jax.random.PRNGKey(0)
    kx, k1, k2, k3, k4 = jax.random.split(key, 5)

    x = jax.random.normal(kx, (N, C_IN, H, W), jnp.float32)
    dw_w = jax.random.normal(k1, (C_IN, 1, K, K), jnp.float32) * 0.1
    dw_b = jax.random.normal(k2, (C_IN,), jnp.float32) * 0.1
    pw_w = jax.random.normal(k3, (C_OUT, C_IN, 1, 1), jnp.float32) * 0.1
    pw_b = jax.random.normal(k4, (C_OUT,), jnp.float32) * 0.1

    out = dsconv_pallas(x, dw_w, dw_b, pw_w, pw_b,
                        stride=STRIDE, padding=PADDING, dilation=DILATION)
    out = jax.block_until_ready(out)

    ref = dsconv_reference(x, dw_w, dw_b, pw_w, pw_b,
                           stride=STRIDE, padding=PADDING, dilation=DILATION)
    ref = jax.block_until_ready(ref)

    H_OUT = (H + 2 * PADDING - DILATION * (K - 1) - 1) // STRIDE + 1
    W_OUT = (W + 2 * PADDING - DILATION * (K - 1) - 1) // STRIDE + 1
    assert out.shape == (N, C_OUT, H_OUT, W_OUT), out.shape
    assert jnp.allclose(out, ref, atol=1e-4, rtol=1e-4), \
        f"max abs err {jnp.max(jnp.abs(out - ref))}"

    print("KERNEL_OK")
</pallas_src>

<mosaic_0001>
module attributes {stable_mosaic.version = 11 : i64} {
  func.func @_dsconv_kernel(%arg0: i32, %arg1: memref<1x4x18x18xf32, #tpu.memory_space<vmem>>, %arg2: memref<3x3x4xf32, #tpu.memory_space<vmem>>, %arg3: memref<8x4xf32, #tpu.memory_space<vmem>>, %arg4: memref<8x1xf32, #tpu.memory_space<vmem>>, %arg5: memref<1x8x256xf32, #tpu.memory_space<vmem>>) attributes {dimension_semantics = [#tpu.dimension_semantics<parallel>], iteration_bounds = array<i64: 2>, scalar_prefetch = 0 : i64, scratch_operands = 0 : i64, tpu.core_type = #tpu.core_type<tc>, window_params = [{transform_indices = @transform_0, window_bounds = array<i64: 1, 4, 18, 18>}, {pipeline_mode = #tpu.pipeline_mode<synchronous>, transform_indices = @transform_1, window_bounds = array<i64: 3, 3, 4>}, {pipeline_mode = #tpu.pipeline_mode<synchronous>, transform_indices = @transform_2, window_bounds = array<i64: 8, 4>}, {pipeline_mode = #tpu.pipeline_mode<synchronous>, transform_indices = @transform_3, window_bounds = array<i64: 8, 1>}, {transform_indices = @transform_4, window_bounds = array<i64: 1, 8, 256>}]} {
    %c0 = arith.constant 0 : index
    %c0_0 = arith.constant 0 : index
    %c0_1 = arith.constant 0 : index
    %0 = vector.load %arg2[%c0, %c0_0, %c0_1] : memref<3x3x4xf32, #tpu.memory_space<vmem>>, vector<3x3x4xf32>
    %c0_2 = arith.constant 0 : index
    %c0_3 = arith.constant 0 : index
    %1 = vector.load %arg3[%c0_2, %c0_3] : memref<8x4xf32, #tpu.memory_space<vmem>>, vector<8x4xf32>
    %c0_4 = arith.constant 0 : index
    %c0_5 = arith.constant 0 : index
    %2 = vector.load %arg4[%c0_4, %c0_5] : memref<8x1xf32, #tpu.memory_space<vmem>>, vector<8x1xf32>
    %cst = arith.constant 0.000000e+00 : f32
    %3 = vector.broadcast %cst : f32 to vector<4x16x16xf32>
    %c0_6 = arith.constant 0 : index
    %c0_7 = arith.constant 0 : index
    %c0_8 = arith.constant 0 : index
    %c0_9 = arith.constant 0 : index
    %4 = vector.load %arg1[%c0_6, %c0_7, %c0_8, %c0_9] : memref<1x4x18x18xf32, #tpu.memory_space<vmem>>, vector<1x4x16x16xf32>
    %5 = vector.shape_cast %4 : vector<1x4x16x16xf32> to vector<4x16x16xf32>
    %6 = vector.extract_strided_slice %0 {offsets = [0, 0, 0], sizes = [1, 1, 4], strides = [1, 1, 1]} : vector<3x3x4xf32> to vector<1x1x4xf32>
    %7 = vector.shape_cast %6 : vector<1x1x4xf32> to vector<4xf32>
    %8 = vector.shape_cast %7 : vector<4xf32> to vector<4x1x1xf32>
    %9 = vector.broadcast %8 : vector<4x1x1xf32> to vector<4x16x16xf32>
    %10 = arith.mulf %5, %9 : vector<4x16x16xf32>
    %11 = arith.addf %3, %10 : vector<4x16x16xf32>
    %c0_10 = arith.constant 0 : index
    %c0_11 = arith.constant 0 : index
    %c0_12 = arith.constant 0 : index
    %c1 = arith.constant 1 : index
    %12 = vector.load %arg1[%c0_10, %c0_11, %c0_12, %c1] : memref<1x4x18x18xf32, #tpu.memory_space<vmem>>, vector<1x4x16x16xf32>
    %13 = vector.shape_cast %12 : vector<1x4x16x16xf32> to vector<4x16x16xf32>
    %14 = vector.extract_strided_slice %0 {offsets = [0, 1, 0], sizes = [1, 1, 4], strides = [1, 1, 1]} : vector<3x3x4xf32> to vector<1x1x4xf32>
    %15 = vector.shape_cast %14 : vector<1x1x4xf32> to vector<4xf32>
    %16 = vector.shape_cast %15 : vector<4xf32> to vector<4x1x1xf32>
    %17 = vector.broadcast %16 : vector<4x1x1xf32> to vector<4x16x16xf32>
    %18 = arith.mulf %13, %17 : vector<4x16x16xf32>
    %19 = arith.addf %11, %18 : vector<4x16x16xf32>
    %c0_13 = arith.constant 0 : index
    %c0_14 = arith.constant 0 : index
    %c0_15 = arith.constant 0 : index
    %c2 = arith.constant 2 : index
    %20 = vector.load %arg1[%c0_13, %c0_14, %c0_15, %c2] : memref<1x4x18x18xf32, #tpu.memory_space<vmem>>, vector<1x4x16x16xf32>
    %21 = vector.shape_cast %20 : vector<1x4x16x16xf32> to vector<4x16x16xf32>
    %22 = vector.extract_strided_slice %0 {offsets = [0, 2, 0], sizes = [1, 1, 4], strides = [1, 1, 1]} : vector<3x3x4xf32> to vector<1x1x4xf32>
    %23 = vector.shape_cast %22 : vector<1x1x4xf32> to vector<4xf32>
    %24 = vector.shape_cast %23 : vector<4xf32> to vector<4x1x1xf32>
    %25 = vector.broadcast %24 : vector<4x1x1xf32> to vector<4x16x16xf32>
    %26 = arith.mulf %21, %25 : vector<4x16x16xf32>
    %27 = arith.addf %19, %26 : vector<4x16x16xf32>
    %c0_16 = arith.constant 0 : index
    %c0_17 = arith.constant 0 : index
    %c1_18 = arith.constant 1 : index
    %c0_19 = arith.constant 0 : index
    %28 = vector.load %arg1[%c0_16, %c0_17, %c1_18, %c0_19] : memref<1x4x18x18xf32, #tpu.memory_space<vmem>>, vector<1x4x16x16xf32>
    %29 = vector.shape_cast %28 : vector<1x4x16x16xf32> to vector<4x16x16xf32>
    %30 = vector.extract_strided_slice %0 {offsets = [1, 0, 0], sizes = [1, 1, 4], strides = [1, 1, 1]} : vector<3x3x4xf32> to vector<1x1x4xf32>
    %31 = vector.shape_cast %30 : vector<1x1x4xf32> to vector<4xf32>
    %32 = vector.shape_cast %31 : vector<4xf32> to vector<4x1x1xf32>
    %33 = vector.broadcast %32 : vector<4x1x1xf32> to vector<4x16x16xf32>
    %34 = arith.mulf %29, %33 : vector<4x16x16xf32>
    %35 = arith.addf %27, %34 : vector<4x16x16xf32>
    %c0_20 = arith.constant 0 : index
    %c0_21 = arith.constant 0 : index
    %c1_22 = arith.constant 1 : index
    %c1_23 = arith.constant 1 : index
    %36 = vector.load %arg1[%c0_20, %c0_21, %c1_22, %c1_23] : memref<1x4x18x18xf32, #tpu.memory_space<vmem>>, vector<1x4x16x16xf32>
    %37 = vector.shape_cast %36 : vector<1x4x16x16xf32> to vector<4x16x16xf32>
    %38 = vector.extract_strided_slice %0 {offsets = [1, 1, 0], sizes = [1, 1, 4], strides = [1, 1, 1]} : vector<3x3x4xf32> to vector<1x1x4xf32>
    %39 = vector.shape_cast %38 : vector<1x1x4xf32> to vector<4xf32>
    %40 = vector.shape_cast %39 : vector<4xf32> to vector<4x1x1xf32>
    %41 = vector.broadcast %40 : vector<4x1x1xf32> to vector<4x16x16xf32>
    %42 = arith.mulf %37, %41 : vector<4x16x16xf32>
    %43 = arith.addf %35, %42 : vector<4x16x16xf32>
    %c0_24 = arith.constant 0 : index
    %c0_25 = arith.constant 0 : index
    %c1_26 = arith.constant 1 : index
    %c2_27 = arith.constant 2 : index
    %44 = vector.load %arg1[%c0_24, %c0_25, %c1_26, %c2_27] : memref<1x4x18x18xf32, #tpu.memory_space<vmem>>, vector<1x4x16x16xf32>
    %45 = vector.shape_cast %44 : vector<1x4x16x16xf32> to vector<4x16x16xf32>
    %46 = vector.extract_strided_slice %0 {offsets = [1, 2, 0], sizes = [1, 1, 4], strides = [1, 1, 1]} : vector<3x3x4xf32> to vector<1x1x4xf32>
    %47 = vector.shape_cast %46 : vector<1x1x4xf32> to vector<4xf32>
    %48 = vector.shape_cast %47 : vector<4xf32> to vector<4x1x1xf32>
    %49 = vector.broadcast %48 : vector<4x1x1xf32> to vector<4x16x16xf32>
    %50 = arith.mulf %45, %49 : vector<4x16x16xf32>
    %51 = arith.addf %43, %50 : vector<4x16x16xf32>
    %c0_28 = arith.constant 0 : index
    %c0_29 = arith.constant 0 : index
    %c2_30 = arith.constant 2 : index
    %c0_31 = arith.constant 0 : index
    %52 = vector.load %arg1[%c0_28, %c0_29, %c2_30, %c0_31] : memref<1x4x18x18xf32, #tpu.memory_space<vmem>>, vector<1x4x16x16xf32>
    %53 = vector.shape_cast %52 : vector<1x4x16x16xf32> to vector<4x16x16xf32>
    %54 = vector.extract_strided_slice %0 {offsets = [2, 0, 0], sizes = [1, 1, 4], strides = [1, 1, 1]} : vector<3x3x4xf32> to vector<1x1x4xf32>
    %55 = vector.shape_cast %54 : vector<1x1x4xf32> to vector<4xf32>
    %56 = vector.shape_cast %55 : vector<4xf32> to vector<4x1x1xf32>
    %57 = vector.broadcast %56 : vector<4x1x1xf32> to vector<4x16x16xf32>
    %58 = arith.mulf %53, %57 : vector<4x16x16xf32>
    %59 = arith.addf %51, %58 : vector<4x16x16xf32>
    %c0_32 = arith.constant 0 : index
    %c0_33 = arith.constant 0 : index
    %c2_34 = arith.constant 2 : index
    %c1_35 = arith.constant 1 : index
    %60 = vector.load %arg1[%c0_32, %c0_33, %c2_34, %c1_35] : memref<1x4x18x18xf32, #tpu.memory_space<vmem>>, vector<1x4x16x16xf32>
    %61 = vector.shape_cast %60 : vector<1x4x16x16xf32> to vector<4x16x16xf32>
    %62 = vector.extract_strided_slice %0 {offsets = [2, 1, 0], sizes = [1, 1, 4], strides = [1, 1, 1]} : vector<3x3x4xf32> to vector<1x1x4xf32>
    %63 = vector.shape_cast %62 : vector<1x1x4xf32> to vector<4xf32>
    %64 = vector.shape_cast %63 : vector<4xf32> to vector<4x1x1xf32>
    %65 = vector.broadcast %64 : vector<4x1x1xf32> to vector<4x16x16xf32>
    %66 = arith.mulf %61, %65 : vector<4x16x16xf32>
    %67 = arith.addf %59, %66 : vector<4x16x16xf32>
    %c0_36 = arith.constant 0 : index
    %c0_37 = arith.constant 0 : index
    %c2_38 = arith.constant 2 : index
    %c2_39 = arith.constant 2 : index
    %68 = vector.load %arg1[%c0_36, %c0_37, %c2_38, %c2_39] : memref<1x4x18x18xf32, #tpu.memory_space<vmem>>, vector<1x4x16x16xf32>
    %69 = vector.shape_cast %68 : vector<1x4x16x16xf32> to vector<4x16x16xf32>
    %70 = vector.extract_strided_slice %0 {offsets = [2, 2, 0], sizes = [1, 1, 4], strides = [1, 1, 1]} : vector<3x3x4xf32> to vector<1x1x4xf32>
    %71 = vector.shape_cast %70 : vector<1x1x4xf32> to vector<4xf32>
    %72 = vector.shape_cast %71 : vector<4xf32> to vector<4x1x1xf32>
    %73 = vector.broadcast %72 : vector<4x1x1xf32> to vector<4x16x16xf32>
    %74 = arith.mulf %69, %73 : vector<4x16x16xf32>
    %75 = arith.addf %67, %74 : vector<4x16x16xf32>
    %76 = vector.shape_cast %75 : vector<4x16x16xf32> to vector<4x256xf32>
    %77 = vector.extract_strided_slice %1 {offsets = [0, 0], sizes = [8, 1], strides = [1, 1]} : vector<8x4xf32> to vector<8x1xf32>
    %78 = vector.shape_cast %77 : vector<8x1xf32> to vector<8xf32>
    %79 = vector.shape_cast %78 : vector<8xf32> to vector<8x1xf32>
    %80 = vector.extract_strided_slice %76 {offsets = [0, 0], sizes = [1, 256], strides = [1, 1]} : vector<4x256xf32> to vector<1x256xf32>
    %81 = vector.shape_cast %80 : vector<1x256xf32> to vector<256xf32>
    %82 = vector.shape_cast %81 : vector<256xf32> to vector<1x256xf32>
    %83 = vector.broadcast %79 : vector<8x1xf32> to vector<8x256xf32>
    %84 = vector.broadcast %82 : vector<1x256xf32> to vector<8x256xf32>
    %85 = arith.mulf %83, %84 : vector<8x256xf32>
    %86 = vector.broadcast %2 : vector<8x1xf32> to vector<8x256xf32>
    %87 = arith.addf %86, %85 : vector<8x256xf32>
    %88 = vector.extract_strided_slice %1 {offsets = [0, 1], sizes = [8, 1], strides = [1, 1]} : vector<8x4xf32> to vector<8x1xf32>
    %89 = vector.shape_cast %88 : vector<8x1xf32> to vector<8xf32>
    %90 = vector.shape_cast %89 : vector<8xf32> to vector<8x1xf32>
    %91 = vector.extract_strided_slice %76 {offsets = [1, 0], sizes = [1, 256], strides = [1, 1]} : vector<4x256xf32> to vector<1x256xf32>
    %92 = vector.shape_cast %91 : vector<1x256xf32> to vector<256xf32>
    %93 = vector.shape_cast %92 : vector<256xf32> to vector<1x256xf32>
    %94 = vector.broadcast %90 : vector<8x1xf32> to vector<8x256xf32>
    %95 = vector.broadcast %93 : vector<1x256xf32> to vector<8x256xf32>
    %96 = arith.mulf %94, %95 : vector<8x256xf32>
    %97 = arith.addf %87, %96 : vector<8x256xf32>
    %98 = vector.extract_strided_slice %1 {offsets = [0, 2], sizes = [8, 1], strides = [1, 1]} : vector<8x4xf32> to vector<8x1xf32>
    %99 = vector.shape_cast %98 : vector<8x1xf32> to vector<8xf32>
    %100 = vector.shape_cast %99 : vector<8xf32> to vector<8x1xf32>
    %101 = vector.extract_strided_slice %76 {offsets = [2, 0], sizes = [1, 256], strides = [1, 1]} : vector<4x256xf32> to vector<1x256xf32>
    %102 = vector.shape_cast %101 : vector<1x256xf32> to vector<256xf32>
    %103 = vector.shape_cast %102 : vector<256xf32> to vector<1x256xf32>
    %104 = vector.broadcast %100 : vector<8x1xf32> to vector<8x256xf32>
    %105 = vector.broadcast %103 : vector<1x256xf32> to vector<8x256xf32>
    %106 = arith.mulf %104, %105 : vector<8x256xf32>
    %107 = arith.addf %97, %106 : vector<8x256xf32>
    %108 = vector.extract_strided_slice %1 {offsets = [0, 3], sizes = [8, 1], strides = [1, 1]} : vector<8x4xf32> to vector<8x1xf32>
    %109 = vector.shape_cast %108 : vector<8x1xf32> to vector<8xf32>
    %110 = vector.shape_cast %109 : vector<8xf32> to vector<8x1xf32>
    %111 = vector.extract_strided_slice %76 {offsets = [3, 0], sizes = [1, 256], strides = [1, 1]} : vector<4x256xf32> to vector<1x256xf32>
    %112 = vector.shape_cast %111 : vector<1x256xf32> to vector<256xf32>
    %113 = vector.shape_cast %112 : vector<256xf32> to vector<1x256xf32>
    %114 = vector.broadcast %110 : vector<8x1xf32> to vector<8x256xf32>
    %115 = vector.broadcast %113 : vector<1x256xf32> to vector<8x256xf32>
    %116 = arith.mulf %114, %115 : vector<8x256xf32>
    %117 = arith.addf %107, %116 : vector<8x256xf32>
    %c0_40 = arith.constant 0 : index
    %c0_41 = arith.constant 0 : index
    %c0_42 = arith.constant 0 : index
    %118 = vector.load %arg5[%c0_40, %c0_41, %c0_42] : memref<1x8x256xf32, #tpu.memory_space<vmem>>, vector<1x8x256xf32>
    %119 = vector.shape_cast %118 : vector<1x8x256xf32> to vector<8x256xf32>
    %120 = vector.shape_cast %117 : vector<8x256xf32> to vector<1x8x256xf32>
    tpu.vector_store %arg5[%c0_40, %c0_41, %c0_42], %120 {strides = array<i32>} : memref<1x8x256xf32, #tpu.memory_space<vmem>>, vector<1x8x256xf32>,
    return
  }
  func.func @transform_0(%arg0: i32) -> (i32, i32, i32, i32) {
    %c0_i32 = arith.constant 0 : i32
    %c0_i32_0 = arith.constant 0 : i32
    %c0_i32_1 = arith.constant 0 : i32
    %c0_i32_2 = arith.constant 0 : i32
    return %arg0, %c0_i32, %c0_i32_0, %c0_i32_1 : i32, i32, i32, i32
  }
  func.func @transform_1(%arg0: i32) -> (i32, i32, i32) {
    %c0_i32 = arith.constant 0 : i32
    %c0_i32_0 = arith.constant 0 : i32
    %c0_i32_1 = arith.constant 0 : i32
    %c0_i32_2 = arith.constant 0 : i32
    return %c0_i32, %c0_i32_0, %c0_i32_1 : i32, i32, i32
  }
  func.func @transform_2(%arg0: i32) -> (i32, i32) {
    %c0_i32 = arith.constant 0 : i32
    %c0_i32_0 = arith.constant 0 : i32
    %c0_i32_1 = arith.constant 0 : i32
    return %c0_i32, %c0_i32_0 : i32, i32
  }
  func.func @transform_3(%arg0: i32) -> (i32, i32) {
    %c0_i32 = arith.constant 0 : i32
    %c0_i32_0 = arith.constant 0 : i32
    %c0_i32_1 = arith.constant 0 : i32
    return %c0_i32, %c0_i32_0 : i32, i32
  }
  func.func @transform_4(%arg0: i32) -> (i32, i32, i32) {
    %c0_i32 = arith.constant 0 : i32
    %c0_i32_0 = arith.constant 0 : i32
    %c0_i32_1 = arith.constant 0 : i32
    return %arg0, %c0_i32, %c0_i32_0 : i32, i32, i32
  }
}

</mosaic_0001>

<bundles_post_ra>
// kernel: tpu_custom_call.1
= control target key start
LH: loop header
LB: loop body
LE: loop exit
PB: predicated region body
PF: predicated region fallthrough
CT: control target
= control target key end

     0   :  { %9 = vsyncpa [#allocation3], 0  ;;  %s1690_s0 = inlined_call_operand.vmem [shape: f32[2,4,18,18], index: 0, kind: input, shape index: {}]   ;;  %s1691_s1 = inlined_call_operand.vmem [shape: f32[3,3,4], index: 1, kind: input, shape index: {}]   ;;  %s1692_s2 = inlined_call_operand.vmem [shape: f32[8,4], index: 2, kind: input, shape index: {}]   ;;  %s1693_s3 = inlined_call_operand.vmem [shape: f32[8,1], index: 3, kind: input, shape index: {}]   ;;  %s1694_s4 = inlined_call_operand.hbm [shape: f32[2,8,256], index: 4, kind: output, shape index: {}]  }
   0x1   :  { %11 = vsyncpa [#allocation3 + $0x1], 0  ;;  %s1306_s15 = smov 0   ;;  %s1308_s16 = smov 0  }
   0x2   :  { %s1310_s17 = smov 0   ;;  %s1312_s18 = smov 0  }
   0x3 LB: > { %s1327_s19 = sadd.s32 4294967295, %s1262_s18   ;;  %s1127_s20 = sadd.s32 4294967294, %s1262_s18   ;;  %s1262_s18 = sphi %s1312_s18, %s1700_s18   ;;  %s1258_s17 = sphi %s1310_s17, %s1699_s17   ;;  %s1254_s16 = sphi %s1308_s16, %s1698_s16   ;;  %s1250_s15 = sphi %s1306_s15, %s1697_s15  }
   0x4   : > { %s1331_s21 = sadd.s32 1, %s1262_s18   ;;  %s113_s22 = sadd.s32 1, %s1258_s17 }
   0x5   : > { %s110_s23 = ssub.s32 %s1262_s18, %s1331_s21  ;;  %p123_p0 = scmp.ne.s32.totalorder %s1258_s17, %s1254_s16 }
   0x6   : > { %p111_p1 = scmp.eq.s32.totalorder %s110_s23, 0  ;;  %p124_p2 = scmp.eq.s32.totalorder %s1327_s19, 1 }
   0x7   : > { %p129_p3 = scmp.ne.s32.totalorder %s1254_s16, %s1250_s15  ;;  %p130_p4 = scmp.eq.s32.totalorder %s1127_s20, 1 }
   0x8   : > { %s1342_s24 = scalar_select %p111_p1, %s1258_s17, %s113_s22  }
   0x9   : > { %p1344_p5 = por %p124_p2, %p123_p0  ;;  %p1348_p6 = por %p130_p4, %p129_p3 }
   0xa   : > { %p1130_p7 = scmp.ge.s32.totalorder %s1262_s18, 1  ;;  %p165_p8 = scmp.lt.s32.totalorder %s1262_s18, 3 }
   0xc   : > { %p166_p9 = pnand %p1130_p7, %p165_p8 }
   0xd   : > { %v209_v0 = vlaneseq (!%p166_p9)  ;;  %v196_v2 = vld [vmem:[%s1691_s1] sm:$0x7] (!%p166_p9)  ;;  %v197_v3 = vld [vmem:[%s1691_s1 + $0x4] sm:$0x7] (!%p166_p9)  ;;  %v198_v10 = vld [vmem:[%s1691_s1 + $0x8] sm:$0x7] (!%p166_p9) }
   0xe   : > { %169 = sbr.rel (%p166_p9) target bundleno = 533 (0x215), region = 36  ;;  %p191_p10 = scmp.lt.s32.totalorder (!%p166_p9), %s1327_s19, 1  ;;  %vm960_vm0 = vcmask (!%p166_p9), 130048   ;;  %vm962_vm1 = vcmask (!%p166_p9), 261120   ;;  %vm964_vm2 = vcmask (!%p166_p9), 392192   ;;  %vm966_vm3 = vcmask (!%p166_p9), 523264  }
   0xf   : > { %v1354_v1 = vshrl.u32 (!%p166_p9), %v209_v0, 7  ;;  %s1264_s12 = smov (!%p166_p9), 127   ;;  %s1265_s13 = smov (!%p166_p9), 126   ;;  %vm968_vm4 = vcmask (!%p166_p9), 654336   ;;  %vm970_vm5 = vcmask (!%p166_p9), 785408   ;;  %vm972_vm6 = vcmask (!%p166_p9), 916480  }
  0x10   : > { %s1272_s27 = smov (!%p166_p9), 32   ;;  %s1273_s28 = smov (!%p166_p9), 64  }
  0x11   : > { %v1363_v4 = vsub.s32 (!%p166_p9), 1, %v1354_v1  ;;  %v1366_v5 = vsub.s32 (!%p166_p9), 2, %v1354_v1  ;;  %v1378_v13 = vsub.s32 (!%p166_p9), 0, %v1354_v1  ;;  %v1399_v26 = vsub.s32 (!%p166_p9), 3, %v1354_v1  ;;  %s1274_s29 = smov (!%p166_p9), 96   ;;  %s1276_s30 = smov (!%p166_p9), 16  }
  0x12   : > { %s1277_s5 = smov (!%p166_p9), 48   ;;  %s1278_s6 = smov (!%p166_p9), 80  }
  0x13   : > { %v251_v6 = vrot.slane (!%p166_p9), %v196_v2, %v1363_v4  ;;  %v440_v7 = vrot.slane (!%p166_p9), %v197_v3, %v1363_v4  ;;  %v322_v8 = vrot.slane (!%p166_p9), %v196_v2, %v1366_v5  ;;  %v511_v9 = vrot.slane (!%p166_p9), %v197_v3, %v1366_v5  ;;  %s1138_s10 = sshll.u32 (!%p166_p9), %s1327_s19, 8  ;;  %s1280_s23 = smov (!%p166_p9), [#allocation2]  }
  0x14   : > { %v629_v11 = vrot.slane (!%p166_p9), %v198_v10, %v1363_v4  ;;  %v700_v12 = vrot.slane (!%p166_p9), %v198_v10, %v1366_v5  ;;  %v212_v14 = vrot.slane (!%p166_p9), %v196_v2, %v1378_v13  ;;  %v401_v15 = vrot.slane (!%p166_p9), %v197_v3, %v1378_v13  ;;  %s1646_s20 = scalar_lea.hbm (!%p166_p9), %s1694_s4, %s1138_s10 }
  0x15   : > { %253 = vbcast.lane.b32.xlu0 %v251_v6, 256  ;;  %442 = vbcast.lane.b32.xlu1 %v440_v7, 256  ;;  %v590_v16 = vrot.slane %v198_v10, %v1378_v13  ;;  %s192_s7 = scalar_select %p191_p10, %s1327_s19, 1 }
  0x17   : > { %s1139_s8 = smul.u32 96, %s192_s7  ;;  %s1279_s7 = smov 112  }
  0x19   : > { %324 = vbcast.lane.b32.xlu0 %v322_v8, 256  ;;  %513 = vbcast.lane.b32.xlu1 %v511_v9, 256  ;;  %s1388_s11 = scalar_lea.vmem %s1690_s0, %s1139_s8  ;;  %s188_s8 = sand.u32 1, %s1254_s16  }
  0x1a   : > { %v202_v18 = vld [vmem:[%s1388_s11 + $0x8] sm:$0xff]  ;;  %v201_v19 = vld [vmem:[%s1388_s11] sm:$0xff]  ;;  %v203_v25 = vld [vmem:[%s1388_s11 + $0x18] sm:$0xff]  ;;  %s1131_s9 = sshll.u32 %s188_s8, 4  ;;  %s1054_s19 = scalar_lea.sflag [#allocation3], %s188_s8 }
  0x1b   : > { %v204_v24 = vld [vmem:[%s1388_s11 + $0x20] sm:$0xff]  ;;  %v206_v30 = vld [vmem:[%s1388_s11 + $0x38] sm:$0xff]  ;;  %v205_v31 = vld [vmem:[%s1388_s11 + $0x30] sm:$0xff] }
  0x1c   : > { %v208_v36 = vld [vmem:[%s1388_s11 + $0x50] sm:$0xff]  ;;  %v207_v37 = vld [vmem:[%s1388_s11 + $0x48] sm:$0xff] }
  0x1d   : > { %631 = vbcast.lane.b32.xlu0 %v629_v11, 256  ;;  %702 = vbcast.lane.b32.xlu1 %v700_v12, 256  ;;  %v1447_v3 = vld [vmem:[%s1388_s11 + $0x1] sm:$0xff]  ;;  %v1450_v6 = vld [vmem:[%s1388_s11 + $0x9] sm:$0xff]  ;;  %v1458_v12 = vld [vmem:[%s1388_s11 + $0x19] sm:$0xff] }
  0x21   : > { %214 = vbcast.lane.b32.xlu0 %v212_v14, 256  ;;  %403 = vbcast.lane.b32.xlu1 %v401_v15, 256  ;;  %v1461_v14 = vld [vmem:[%s1388_s11 + $0x21] sm:$0xff] }
  0x25   : > { %592 = vbcast.lane.b32.xlu0 %v590_v16, 256 }
  0x87   : > { %v254_v17 = vpop.permute.xlu0 %253  ;;  %v443_v60 = vpop.permute.xlu1 %442 }
  0x88   : > { %v258_v20 = vrot.slane %v254_v17, %v1378_v13  ;;  %v262_v21 = vrot.slane %v254_v17, %v1363_v4  ;;  %v266_v27 = vrot.slane %v254_v17, %v1366_v5  ;;  %v270_v33 = vrot.slane %v254_v17, %v1399_v26 }
  0x89   : > { %v447_v2 = vrot.slane %v443_v60, %v1378_v13  ;;  %v451_v11 = vrot.slane %v443_v60, %v1363_v4  ;;  %v455_v15 = vrot.slane %v443_v60, %v1366_v5 }
  0x8a   : > { %v272_v22 = vmul.f32 %v258_v20, %v202_v18  ;;  %v271_v23 = vmul.f32 %v258_v20, %v201_v19  ;;  %v274_v28 = vmul.f32 %v262_v21, %v204_v24  ;;  %v273_v29 = vmul.f32 %v262_v21, %v203_v25 }
  0x8b   : > { %v325_v32 = vpop.permute.xlu0 %324  ;;  %v276_v34 = vmul.f32 %v266_v27, %v206_v30  ;;  %v275_v35 = vmul.f32 %v266_v27, %v205_v31  ;;  %v278_v39 = vmul.f32 %v270_v33, %v208_v36  ;;  %v277_v40 = vmul.f32 %v270_v33, %v207_v37  ;;  %v514_v20 = vpop.permute.xlu1 %513 }
  0x8c   : > { %289 = vrot.lane.b32.xlu0 %v272_v22, %s1264_s12  ;;  %287 = vrot.lane.b32.xlu1 %v271_v23, %s1264_s12  ;;  %v329_v38 = vrot.slane %v325_v32, %v1378_v13  ;;  %v333_v44 = vrot.slane %v325_v32, %v1363_v4  ;;  %v337_v49 = vrot.slane %v325_v32, %v1366_v5 }
  0x8d   : > { %v341_v62 = vrot.slane %v325_v32, %v1399_v26  ;;  %v460_v9 = vmul.f32 %v447_v2, %v1447_v3  ;;  %v461_v10 = vmul.f32 %v447_v2, %v1450_v6  ;;  %v462_v16 = vmul.f32 %v451_v11, %v1458_v12 }
  0x8e   : > { %v342_v41 = vmul.f32 %v329_v38, %v201_v19  ;;  %v343_v42 = vmul.f32 %v329_v38, %v202_v18  ;;  %v344_v50 = vmul.f32 %v333_v44, %v203_v25  ;;  %v345_v51 = vmul.f32 %v333_v44, %v204_v24 }
  0x8f   : > { %v1414_v43 = vpop.permute.xlu0 %631  ;;  %v346_v63 = vmul.f32 %v337_v49, %v205_v31  ;;  %v347_v0 = vmul.f32 %v337_v49, %v206_v30  ;;  %v348_v7 = vmul.f32 %v341_v62, %v207_v37  ;;  %v349_v8 = vmul.f32 %v341_v62, %v208_v36  ;;  %v1527_v49 = vld [vmem:[%s1388_s11 + $0x1a] sm:$0xff] }
  0x90   : > { %293 = vrot.lane.b32.xlu0 %v274_v28, %s1264_s12  ;;  %291 = vrot.lane.b32.xlu1 %v273_v29, %s1264_s12  ;;  %v463_v17 = vmul.f32 %v451_v11, %v1461_v14  ;;  %v459_v21 = vrot.slane %v443_v60, %v1399_v26  ;;  %v518_v27 = vrot.slane %v514_v20, %v1378_v13  ;;  %v1536_v62 = vld [vmem:[%s1388_s11 + $0x3a] sm:$0xff] }
  0x91   : > { %v522_v32 = vrot.slane %v514_v20, %v1363_v4  ;;  %v526_v33 = vrot.slane %v514_v20, %v1366_v5  ;;  %v648_v2 = vrot.slane %v1414_v43, %v1399_v26 }
  0x93   : > { %v215_v45 = vpop.permute.xlu0 %214 }
  0x94   : > { %297 = vrot.lane.b32.xlu0 %v276_v34, %s1264_s12  ;;  %295 = vrot.lane.b32.xlu1 %v275_v35, %s1264_s12  ;;  %v219_v46 = vrot.slane %v215_v45, %v1378_v13  ;;  %v223_v47 = vrot.slane %v215_v45, %v1363_v4  ;;  %v227_v48 = vrot.slane %v215_v45, %v1366_v5 }
  0x95   : > { %v231_v52 = vrot.slane %v215_v45, %v1399_v26  ;;  %v534_v34 = vmul.f32 %v522_v32, %v1461_v14  ;;  %v533_v35 = vmul.f32 %v522_v32, %v1458_v12  ;;  %v1582_v32 = vld [vmem:[%s1692_s2] sm:$0xff] }
  0x96   : > { %v1424_v53 = vmul.f32 %v219_v46, %v202_v18  ;;  %v1426_v54 = vmul.f32 %v219_v46, %v201_v19  ;;  %v1428_v55 = vmul.f32 %v223_v47, %v204_v24  ;;  %v1430_v56 = vmul.f32 %v223_v47, %v203_v25  ;;  %v1469_v18 = vld [vmem:[%s1388_s11 + $0x31] sm:$0xff]  ;;  %v1472_v19 = vld [vmem:[%s1388_s11 + $0x39] sm:$0xff]  ;;  %v1480_v24 = vld [vmem:[%s1388_s11 + $0x49] sm:$0xff] }
  0x97   : > { %v1434_v57 = vmul.f32 %v227_v48, %v206_v30  ;;  %v1436_v58 = vmul.f32 %v227_v48, %v205_v31  ;;  %v1438_v59 = vmul.f32 %v231_v52, %v208_v36  ;;  %v1440_v61 = vmul.f32 %v231_v52, %v207_v37  ;;  %v1483_v25 = vld [vmem:[%s1388_s11 + $0x51] sm:$0xff]  ;;  %v1524_v48 = vld [vmem:[%s1388_s11 + $0x22] sm:$0xff] }
  0x98   : > { %301 = vrot.lane.b32.xlu0 %v278_v39, %s1264_s12  ;;  %299 = vrot.lane.b32.xlu1 %v277_v40, %s1264_s12  ;;  %v464_v22 = vmul.f32 %v455_v15, %v1469_v18  ;;  %v465_v23 = vmul.f32 %v455_v15, %v1472_v19  ;;  %v466_v28 = vmul.f32 %v459_v21, %v1480_v24  ;;  %v1510_v40 = vld [vmem:[%s1388_s11 + $0xa] sm:$0xff] }
  0x99   : > { %v467_v29 = vmul.f32 %v459_v21, %v1483_v25  ;;  %v532_v30 = vmul.f32 %v518_v27, %v1450_v6  ;;  %v531_v31 = vmul.f32 %v518_v27, %v1447_v3  ;;  %v530_v36 = vrot.slane %v514_v20, %v1399_v26 }
  0x9a   : > { %v536_v37 = vmul.f32 %v526_v33, %v1472_v19  ;;  %v535_v38 = vmul.f32 %v526_v33, %v1469_v18  ;;  %v636_v39 = vrot.slane %v1414_v43, %v1378_v13  ;;  %v640_v47 = vrot.slane %v1414_v43, %v1363_v4  ;;  %v200_v33 = vld [vmem:[%s1693_s3] sm:$0xff] }
  0x9b   : > { %v537_v44 = vmul.f32 %v530_v36, %v1480_v24 }
  0x9c   : > { %358 = vrot.lane.b32.xlu0 %v342_v41, %s1265_s13  ;;  %360 = vrot.lane.b32.xlu1 %v343_v42, %s1265_s13  ;;  %v1513_v41 = vld [vmem:[%s1388_s11 + $0x2] sm:$0xff]  ;;  %v538_v42 = vmul.f32 %v530_v36, %v1483_v25  ;;  %v650_v45 = vmul.f32 %v636_v39, %v1510_v40  ;;  %v652_v52 = vmul.f32 %v640_v47, %v1524_v48  ;;  %v1589_v36 = vpop.permute.xlu0 %592 }
  0x9d   : > { %v649_v46 = vmul.f32 %v636_v39, %v1513_v41  ;;  %v651_v60 = vmul.f32 %v640_v47, %v1527_v49 }
  0xa0   : > { %362 = vrot.lane.b32.xlu0 %v344_v50, %s1265_s13  ;;  %364 = vrot.lane.b32.xlu1 %v345_v51, %s1265_s13  ;;  %v1266_v50 = vmov 0   ;;  %v644_v51 = vrot.slane %v1414_v43, %v1366_v5 }
  0xa1   : > { %1195 = vset.pattern.permute.xlu1 %v1266_v50  ;;  %1196 = vset.pattern.permute.xlu0 %v1266_v50 }
  0xa4   : > { %366 = vrot.lane.b32.xlu0 %v346_v63, %s1265_s13  ;;  %368 = vrot.lane.b32.xlu1 %v347_v0, %s1265_s13  ;;  %v1539_v63 = vld [vmem:[%s1388_s11 + $0x32] sm:$0xff]  ;;  %v703_v0 = vpop.permute.xlu1 %702 }
  0xa5   : > { %v707_v11 = vrot.slane %v703_v0, %v1378_v13  ;;  %v711_v20 = vrot.slane %v703_v0, %v1363_v4  ;;  %v715_v21 = vrot.slane %v703_v0, %v1366_v5  ;;  %v719_v27 = vrot.slane %v703_v0, %v1399_v26 }
  0xa7   : > { %v721_v43 = vmul.f32 %v707_v11, %v1510_v40 }
  0xa8   : > { %370 = vrot.lane.b32.xlu0 %v348_v7, %s1265_s13  ;;  %372 = vrot.lane.b32.xlu1 %v349_v8, %s1265_s13  ;;  %v654_v7 = vmul.f32 %v644_v51, %v1536_v62  ;;  %v653_v8 = vmul.f32 %v644_v51, %v1539_v63 }
  0xac   : > { %476 = vrot.lane.b32.xlu0 %v460_v9, %s1264_s12  ;;  %478 = vrot.lane.b32.xlu1 %v461_v10, %s1264_s12  ;;  %v1548_v9 = vld [vmem:[%s1388_s11 + $0x52] sm:$0xff]  ;;  %v1551_v10 = vld [vmem:[%s1388_s11 + $0x4a] sm:$0xff]  ;;  %s190_s11 = scalar_lea.vmem [#allocation2], %s1131_s9 }
  0xad   : > { %v656_v15 = vmul.f32 %v648_v2, %v1548_v9 }
  0xb0   : > { %480 = vrot.lane.b32.xlu0 %v462_v16, %s1264_s12  ;;  %482 = vrot.lane.b32.xlu1 %v463_v17, %s1264_s12  ;;  %v655_v16 = vmul.f32 %v648_v2, %v1551_v10  ;;  %v720_v17 = vmul.f32 %v707_v11, %v1513_v41 }
  0xb4   : > { %484 = vrot.lane.b32.xlu0 %v464_v22, %s1264_s12  ;;  %486 = vrot.lane.b32.xlu1 %v465_v23, %s1264_s12  ;;  %v723_v22 = vmul.f32 %v711_v20, %v1524_v48  ;;  %v722_v23 = vmul.f32 %v711_v20, %v1527_v49 }
  0xb8   : > { %488 = vrot.lane.b32.xlu0 %v466_v28, %s1264_s12  ;;  %490 = vrot.lane.b32.xlu1 %v467_v29, %s1264_s12  ;;  %v725_v28 = vmul.f32 %v715_v21, %v1536_v62  ;;  %v724_v29 = vmul.f32 %v715_v21, %v1539_v63 }
  0xbc   : > { %549 = vrot.lane.b32.xlu0 %v532_v30, %s1265_s13  ;;  %547 = vrot.lane.b32.xlu1 %v531_v31, %s1265_s13  ;;  %v727_v30 = vmul.f32 %v719_v27, %v1548_v9  ;;  %v726_v31 = vmul.f32 %v719_v27, %v1551_v10 }
  0xc0   : > { %553 = vrot.lane.b32.xlu0 %v534_v34, %s1265_s13  ;;  %551 = vrot.lane.b32.xlu1 %v533_v35, %s1265_s13  ;;  %v1267_v34 = vmov 1   ;;  %v404_v35 = vpop.permute.xlu1 %403 }
  0xc1   : > { %v416_v21 = vrot.slane %v404_v35, %v1366_v5 }
  0xc4   : > { %557 = vrot.lane.b32.xlu0 %v536_v37, %s1265_s13  ;;  %555 = vrot.lane.b32.xlu1 %v535_v38, %s1265_s13 }
  0xc8   : > { %561 = vrot.lane.b32.xlu0 %v538_v42, %s1265_s13  ;;  %559 = vrot.lane.b32.xlu1 %v537_v44, %s1265_s13  ;;  %v1268_v44 = vmov 3  }
  0xcc   : > { %667 = vrot.lane.b32.xlu0 %v650_v45, %s1264_s12  ;;  %665 = vrot.lane.b32.xlu1 %v649_v46, %s1264_s12  ;;  %v1269_v45 = vmov 2  }
  0xd0   : > { %671 = vrot.lane.b32.xlu0 %v652_v52, %s1264_s12  ;;  %669 = vrot.lane.b32.xlu1 %v651_v60, %s1264_s12 }
  0xd4   : > { %675 = vrot.lane.b32.xlu0 %v654_v7, %s1264_s12  ;;  %673 = vrot.lane.b32.xlu1 %v653_v8, %s1264_s12 }
  0xd8   : > { %679 = vrot.lane.b32.xlu0 %v656_v15, %s1264_s12  ;;  %677 = vrot.lane.b32.xlu1 %v655_v16, %s1264_s12  ;;  %v412_v15 = vrot.slane %v404_v35, %v1363_v4  ;;  %s1068_s12 = sshll.u32 %s190_s11, 4  ;;  %s1648_s12 = int_to_ptr.vmem [resolvable:$true] %s1068_s12 }
  0xd9   : > { %s1200_s22 = scalar_lea.vmem %s1648_s12, 256 }
  0xda   : > { %p1201_p11 = scmp.ne.s32.totalorder %s1648_s12, %s1200_s22 }
  0xdc   : > { %738 = vrot.lane.b32.xlu0 %v721_v43, %s1265_s13  ;;  %736 = vrot.lane.b32.xlu1 %v720_v17, %s1265_s13  ;;  %p1202_p12 = pnand %p1201_p11, %p1344_p5 }
  0xde   : > { %p1203_p13 = pneg %p1202_p12 }
  0xe0   : > { %742 = vrot.lane.b32.xlu0 %v723_v22, %s1265_s13  ;;  %740 = vrot.lane.b32.xlu1 %v722_v23, %s1265_s13 }
  0xe4   : > { %746 = vrot.lane.b32.xlu0 %v725_v28, %s1265_s13  ;;  %744 = vrot.lane.b32.xlu1 %v724_v29, %s1265_s13  ;;  %v424_v28 = vmul.f32 %v412_v15, %v1461_v14 }
  0xe8   : > { %750 = vrot.lane.b32.xlu0 %v727_v30, %s1265_s13  ;;  %748 = vrot.lane.b32.xlu1 %v726_v31, %s1265_s13  ;;  %v420_v31 = vrot.slane %v404_v35, %v1399_v26 }
  0xea   : > { %v427_v14 = vmul.f32 %v420_v31, %v1480_v24  ;;  %v601_v24 = vrot.slane %v1589_v36, %v1363_v4 }
  0xec   : > { %983 = vperm.xlu1 %1195, %v1582_v32   ;;  %998 = vperm.xlu0 %1196, %v200_v33  }
  0xf0   : > { %1197 = vset.pattern.permute.xlu1 %v1267_v34  ;;  %1199 = vset.pattern.permute.xlu0 %v1268_v44 }
  0xf1   : > { %1004 = vperm.xlu1 %1197, %v1582_v32  }
  0xf5   : > { %1198 = vset.pattern.permute.xlu1 %v1269_v45 }
  0xfe   : > { %v290_v37 = vpop.permute.xlu0 %289  ;;  %v288_v38 = vpop.permute.xlu1 %287 }
  0xff   : > { %v312_v39 = vadd.f32 %v290_v37, %v1424_v53  ;;  %v311_v42 = vadd.f32 %v288_v38, %v1426_v54  ;;  %v408_v54 = vrot.slane %v404_v35, %v1378_v13  ;;  %v425_v37 = vmul.f32 %v416_v21, %v1469_v18 }
 0x100   : > { %v426_v38 = vmul.f32 %v416_v21, %v1472_v19 }
 0x101   : > { %v421_v17 = vmul.f32 %v408_v54, %v1447_v3 }
 0x102   : > { %v294_v46 = vpop.permute.xlu0 %293  ;;  %v292_v47 = vpop.permute.xlu1 %291 }
 0x103   : > { %v314_v50 = vadd.f32 %v294_v46, %v1428_v55  ;;  %v313_v51 = vadd.f32 %v292_v47, %v1430_v56  ;;  %v428_v47 = vmul.f32 %v420_v31, %v1483_v25 }
 0x106   : > { %v298_v52 = vpop.permute.xlu0 %297  ;;  %v296_v60 = vpop.permute.xlu1 %295 }
 0x107   : > { %v316_v0 = vadd.f32 %v298_v52, %v1434_v57  ;;  %v315_v2 = vadd.f32 %v296_v60, %v1436_v58  ;;  %v422_v57 = vmul.f32 %v408_v54, %v1450_v6 }
 0x10a   : > { %v302_v7 = vpop.permute.xlu0 %301  ;;  %v300_v53 = vpop.permute.xlu1 %299 }
 0x10b   : > { %v318_v8 = vadd.f32 %v302_v7, %v1438_v59  ;;  %v317_v11 = vadd.f32 %v300_v53, %v1440_v61  ;;  %v423_v61 = vmul.f32 %v412_v15, %v1458_v12  ;;  %v597_v53 = vrot.slane %v1589_v36, %v1378_v13 }
 0x10e   : > { %v359_v16 = vpop.permute.xlu0 %358  ;;  %v361_v55 = vpop.permute.xlu1 %360 }
 0x10f   : > { %v382_v43 = vadd.f32 %v359_v16, %v311_v42  ;;  %v383_v56 = vadd.f32 %v361_v55, %v312_v39  ;;  %v611_v55 = vmul.f32 %v597_v53, %v1510_v40 }
 0x111   : > { %v429_v20 = vadd.f32 %v421_v17, %v382_v43  ;;  %v430_v58 = vadd.f32 %v422_v57, %v383_v56  ;;  %v610_v43 = vmul.f32 %v597_v53, %v1513_v41  ;;  %v609_v41 = vrot.slane %v1589_v36, %v1399_v26 }
 0x112   : > { %v363_v22 = vpop.permute.xlu0 %362  ;;  %v365_v23 = vpop.permute.xlu1 %364  ;;  %v1270_v53 = vmov 1983009808  }
 0x113   : > { %v384_v27 = vadd.f32 %v363_v22, %v313_v51  ;;  %v385_v59 = vadd.f32 %v365_v23, %v314_v50  ;;  %v605_v22 = vrot.slane %v1589_v36, %v1366_v5  ;;  %v616_v36 = vmul.f32 %v609_v41, %v1551_v10 }
 0x115   : > { %v431_v29 = vadd.f32 %v423_v61, %v384_v27  ;;  %v432_v30 = vadd.f32 %v424_v28, %v385_v59  ;;  %v613_v59 = vmul.f32 %v601_v24, %v1524_v48  ;;  %v612_v61 = vmul.f32 %v601_v24, %v1527_v49 }
 0x116   : > { %v367_v33 = vpop.permute.xlu0 %366  ;;  %v369_v3 = vpop.permute.xlu1 %368 }
 0x117   : > { %v386_v34 = vadd.f32 %v367_v33, %v315_v2  ;;  %v387_v6 = vadd.f32 %v369_v3, %v316_v0 }
 0x119   : > { %v433_v39 = vadd.f32 %v425_v37, %v386_v34  ;;  %v434_v42 = vadd.f32 %v426_v38, %v387_v6  ;;  %v615_v6 = vmul.f32 %v605_v22, %v1536_v62  ;;  %v614_v37 = vmul.f32 %v605_v22, %v1539_v63 }
 0x11a   : > { %v371_v44 = vpop.permute.xlu0 %370  ;;  %v373_v45 = vpop.permute.xlu1 %372 }
 0x11b   : > { %v388_v46 = vadd.f32 %v371_v44, %v317_v11  ;;  %v389_v12 = vadd.f32 %v373_v45, %v318_v8 }
 0x11d   : > { %v435_v50 = vadd.f32 %v427_v14, %v388_v46  ;;  %v436_v35 = vadd.f32 %v428_v47, %v389_v12  ;;  %v617_v12 = vmul.f32 %v609_v41, %v1548_v9 }
 0x11e   : > { %v477_v51 = vpop.permute.xlu0 %476  ;;  %v479_v52 = vpop.permute.xlu1 %478 }
 0x11f   : > { %v500_v54 = vadd.f32 %v477_v51, %v429_v20  ;;  %v501_v11 = vadd.f32 %v479_v52, %v430_v58 }
 0x122   : > { %v481_v60 = vpop.permute.xlu0 %480  ;;  %v483_v0 = vpop.permute.xlu1 %482 }
 0x123   : > { %v502_v56 = vadd.f32 %v481_v60, %v431_v29  ;;  %v503_v17 = vadd.f32 %v483_v0, %v432_v30 }
 0x126   : > { %v485_v2 = vpop.permute.xlu0 %484  ;;  %v487_v18 = vpop.permute.xlu1 %486 }
 0x127   : > { %v504_v28 = vadd.f32 %v485_v2, %v433_v39  ;;  %v505_v31 = vadd.f32 %v487_v18, %v434_v42 }
 0x12a   : > { %v489_v7 = vpop.permute.xlu0 %488  ;;  %v491_v19 = vpop.permute.xlu1 %490 }
 0x12b   : > { %v506_v38 = vadd.f32 %v489_v7, %v435_v50  ;;  %v507_v44 = vadd.f32 %v491_v19, %v436_v35 }
 0x12e   : > { %v550_v8 = vpop.permute.xlu0 %549  ;;  %v548_v25 = vpop.permute.xlu1 %547 }
 0x12f   : > { %v572_v15 = vadd.f32 %v550_v8, %v501_v11  ;;  %v571_v16 = vadd.f32 %v548_v25, %v500_v54  ;;  %v771_v54 = vunpack.c.l.s4 %v1270_v53 }
 0x131   : > { %v619_v57 = vadd.f32 %v611_v55, %v572_v15  ;;  %v618_v21 = vadd.f32 %v610_v43, %v571_v16  ;;  %v772_v8 = vunpack.c.0.s8 %v771_v54  ;;  %v1271_v16 = vmov 1934713408  }
 0x132   : > { %v554_v20 = vpop.permute.xlu0 %553  ;;  %v552_v58 = vpop.permute.xlu1 %551  ;;  %v803_v55 = vunpack.c.l.s4 %v1271_v16  ;;  %v1275_v54 = vmov 0.0  }
 0x133   : > { %v574_v23 = vadd.f32 %v554_v20, %v503_v17  ;;  %v573_v27 = vadd.f32 %v552_v58, %v502_v56  ;;  %v775_v41 = vsub.s32 %v772_v8, %v1354_v1 }
 0x135   : > { %v621_v40 = vadd.f32 %v613_v59, %v574_v23  ;;  %v620_v33 = vadd.f32 %v612_v61, %v573_v27 }
 0x136   : > { %v558_v29 = vpop.permute.xlu0 %557  ;;  %v556_v30 = vpop.permute.xlu1 %555 }
 0x137   : > { %v576_v3 = vadd.f32 %v558_v29, %v505_v31  ;;  %v575_v34 = vadd.f32 %v556_v30, %v504_v28  ;;  %v804_v29 = vunpack.c.0.s8 %v803_v55 }
 0x139   : > { %v623_v48 = vadd.f32 %v615_v6, %v576_v3  ;;  %v622_v45 = vadd.f32 %v614_v37, %v575_v34 }
 0x13a   : > { %v562_v49 = vpop.permute.xlu0 %561  ;;  %v560_v39 = vpop.permute.xlu1 %559 }
 0x13b   : > { %v578_v42 = vadd.f32 %v562_v49, %v507_v44  ;;  %v577_v46 = vadd.f32 %v560_v39, %v506_v38 }
 0x13d   : > { %v625_v14 = vadd.f32 %v617_v12, %v578_v42  ;;  %v624_v47 = vadd.f32 %v616_v36, %v577_v46 }
 0x13e   : > { %v668_v51 = vpop.permute.xlu0 %667  ;;  %v666_v52 = vpop.permute.xlu1 %665 }
 0x13f   : > { %v690_v11 = vadd.f32 %v668_v51, %v619_v57  ;;  %v689_v9 = vadd.f32 %v666_v52, %v618_v21 }
 0x142   : > { %v672_v60 = vpop.permute.xlu0 %671  ;;  %v670_v62 = vpop.permute.xlu1 %669 }
 0x143   : > { %v692_v59 = vadd.f32 %v672_v60, %v621_v40  ;;  %v691_v61 = vadd.f32 %v670_v62, %v620_v33  ;;  %v807_v40 = vsub.s32 %v804_v29, %v1354_v1 }
 0x146   : > { %v676_v0 = vpop.permute.xlu0 %675  ;;  %v674_v63 = vpop.permute.xlu1 %673 }
 0x147   : > { %v694_v24 = vadd.f32 %v676_v0, %v623_v48  ;;  %v693_v10 = vadd.f32 %v674_v63, %v622_v45 }
 0x14a   : > { %v680_v50 = vpop.permute.xlu0 %679  ;;  %v678_v35 = vpop.permute.xlu1 %677 }
 0x14b   : > { %v696_v28 = vadd.f32 %v680_v50, %v625_v14  ;;  %v695_v57 = vadd.f32 %v678_v35, %v624_v47 }
 0x14e   : > { %v739_v2 = vpop.permute.xlu0 %738  ;;  %v737_v18 = vpop.permute.xlu1 %736 }
 0x14f   : > { %v761_v43 = vadd.f32 %v739_v2, %v690_v11  ;;  %v760_v56 = vadd.f32 %v737_v18, %v689_v9 }
 0x152   : > { %v743_v7 = vpop.permute.xlu0 %742  ;;  %v741_v19 = vpop.permute.xlu1 %740 }
 0x153   : > { %v763_v30 = vadd.f32 %v743_v7, %v692_v59  ;;  %v762_v3 = vadd.f32 %v741_v19, %v691_v61 }
 0x156   : > { %v747_v25 = vpop.permute.xlu0 %746  ;;  %v745_v15 = vpop.permute.xlu1 %744 }
 0x157   : > { %v765_v17 = vadd.f32 %v747_v25, %v694_v24  ;;  %v764_v22 = vadd.f32 %v745_v15, %v693_v10 }
 0x159   : > { %v836_v20 = vcombine.low %v761_v43, %v765_v17  ;;  %v837_v58 = vcombine.high %v761_v43, %v765_v17  ;;  %v768_v23 = vcombine.low %v760_v56, %v764_v22  ;;  %v769_v27 = vcombine.high %v760_v56, %v764_v22 }
 0x15a   : > { %v751_v21 = vpop.permute.xlu0 %750  ;;  %v749_v31 = vpop.permute.xlu1 %748 }
 0x15b   : > { %v767_v34 = vadd.f32 %v751_v21, %v696_v28  ;;  %v766_v6 = vadd.f32 %v749_v31, %v695_v57  ;;  %v844_v45 = vrot.slane %v836_v20, %v775_v41  ;;  %v776_v49 = vrot.slane %v768_v23, %v775_v41 }
 0x15c   : > { %v851_v12 = vrot.slane %v837_v58, %v775_v41  ;;  %v783_v36 = vrot.slane %v769_v27, %v775_v41 }
 0x15d   : > { %v852_v37 = vcombine.low %v763_v30, %v767_v34  ;;  %v853_v38 = vcombine.high %v763_v30, %v767_v34  ;;  %v784_v44 = vcombine.low %v762_v3, %v766_v6  ;;  %v785_v48 = vcombine.high %v762_v3, %v766_v6 }
 0x15f   : > { %v860_v33 = vrot.slane %v852_v37, %v775_v41  ;;  %v867_v39 = vrot.slane %v853_v38, %v775_v41  ;;  %v792_v42 = vrot.slane %v784_v44, %v775_v41  ;;  %v799_v46 = vrot.slane %v785_v48, %v775_v41 }
 0x161   : > { %v868_v14 = vcombine.low %v844_v45, %v860_v33  ;;  %v800_v47 = vcombine.low %v776_v49, %v792_v42  ;;  %v869_v51 = vcombine.high %v844_v45, %v860_v33  ;;  %v801_v52 = vcombine.high %v776_v49, %v792_v42 }
 0x162   : > { %v816_v60 = vcombine.low %v783_v36, %v799_v46  ;;  %v884_v62 = vcombine.low %v851_v12, %v867_v39  ;;  %v885_v0 = vcombine.high %v851_v12, %v867_v39  ;;  %v817_v63 = vcombine.high %v783_v36, %v799_v46 }
 0x163   : > { %v883_v50 = vrot.slane %v869_v51, %v807_v40  ;;  %v815_v35 = vrot.slane %v801_v52, %v807_v40  ;;  %v876_v19 = vrot.slane %v868_v14, %v807_v40  ;;  %v808_v53 = vrot.slane %v800_v47, %v807_v40 }
 0x164   : > { %v824_v1 = vrot.slane %v816_v60, %v807_v40  ;;  %v892_v2 = vrot.slane %v884_v62, %v807_v40  ;;  %v899_v18 = vrot.slane %v885_v0, %v807_v40  ;;  %v831_v7 = vrot.slane %v817_v63, %v807_v40 }
 0x165   : > { %937 = vrot.lane.b32.xlu0 %v883_v50, %s1272_s27  ;;  %909 = vrot.lane.b32.xlu1 %v815_v35, %s1272_s27  ;;  %v900_v11 = vcombine.high %v876_v19, %v1275_v54  ;;  %v832_v9 = vcombine.high %v808_v53, %v1275_v54  ;;  %v901_v24 = vcombine.high %v883_v50, %v1275_v54  ;;  %s1204_s27 = sshll.u32 %s1280_s23, 4  ;;  %s1205_s27 = int_to_ptr.vmem [resolvable:$false] %s1204_s27 }
 0x166   : > { %v833_v10 = vcombine.high %v815_v35, %v1275_v54  ;;  %v834_v8 = vcombine.high %v824_v1, %v1275_v54  ;;  %v902_v25 = vcombine.high %v892_v2, %v1275_v54  ;;  %v903_v15 = vcombine.high %v899_v18, %v1275_v54  ;;  %p1207_p0 = scmp.lt.s32.totalorder %s1648_s12, %s1205_s27 }
 0x167   : > { %v835_v16 = vcombine.high %v831_v7, %v1275_v54 }
 0x169   : > { %917 = vrot.lane.b32.xlu0 %v824_v1, %s1273_s28  ;;  %945 = vrot.lane.b32.xlu1 %v892_v2, %s1273_s28  ;;  %s1206_s28 = scalar_lea.vmem %s1205_s27, 512 }
 0x16a   : > { %p1208_p1 = scmp.lt.s32.totalorder %s1206_s28, %s1200_s22 }
 0x16b   : > { %v984_v55 = vpop.permute.xlu1 %983  ;;  %v999_v43 = vpop.permute.xlu0 %998 }
 0x16c   : > { %p1209_p2 = por %p1208_p1, %p1207_p0 }
 0x16d   : > { %953 = vrot.lane.b32.xlu0 %v899_v18, %s1274_s29  ;;  %925 = vrot.lane.b32.xlu1 %v831_v7, %s1274_s29 }
 0x16e   : > { %p1210_p3 = pnand %p1209_p2, %p1203_p13 }
 0x170   : > { %v1005_v56 = vpop.permute.xlu1 %1004 }
 0x171   : > { %933 = vrot.lane.b32.xlu0 %v900_v11, %s1276_s30  ;;  %905 = vrot.lane.b32.xlu1 %v832_v9, %s1276_s30 }
 0x175   : > { %941 = vrot.lane.b32.xlu0 %v901_v24, %s1277_s5  ;;  %913 = vrot.lane.b32.xlu1 %v833_v10, %s1277_s5 }
 0x179   : > { %921 = vrot.lane.b32.xlu0 %v834_v8, %s1278_s6  ;;  %949 = vrot.lane.b32.xlu1 %v902_v25, %s1278_s6 }
 0x17d   : > { %957 = vrot.lane.b32.xlu0 %v903_v15, %s1279_s7  ;;  %929 = vrot.lane.b32.xlu1 %v835_v16, %s1279_s7 }
 0x181   : > { %1036 = vperm.xlu0 %1199, %v1582_v32   ;;  %1020 = vperm.xlu1 %1198, %v1582_v32  }
 0x1d7   : > { %v938_v17 = vpop.permute.xlu0 %937  ;;  %v910_v22 = vpop.permute.xlu1 %909 }
 0x1db   : > { %v918_v20 = vpop.permute.xlu0 %917  ;;  %v946_v58 = vpop.permute.xlu1 %945 }
 0x1df   : > { %v954_v23 = vpop.permute.xlu0 %953  ;;  %v926_v27 = vpop.permute.xlu1 %925 }
 0x1e3   : > { %v934_v59 = vpop.permute.xlu0 %933  ;;  %v906_v61 = vpop.permute.xlu1 %905 }
 0x1e4   : > { %v974_v28 = vsel %vm960_vm0, %v876_v19, %v934_v59  ;;  %v961_v57 = vsel %vm960_vm0, %v808_v53, %v906_v61 }
 0x1e5   : > { %v975_v41 = vsel %vm962_vm1, %v974_v28, %v938_v17  ;;  %v963_v32 = vsel %vm962_vm1, %v961_v57, %v910_v22 }
 0x1e7   : > { %v942_v21 = vpop.permute.xlu0 %941  ;;  %v914_v31 = vpop.permute.xlu1 %913 }
 0x1e8   : > { %v976_v29 = vsel %vm964_vm2, %v975_v41, %v942_v21  ;;  %v965_v30 = vsel %vm964_vm2, %v963_v32, %v914_v31 }
 0x1e9   : > { %v967_v6 = vsel %vm966_vm3, %v965_v30, %v918_v20  ;;  %v977_v37 = vsel %vm966_vm3, %v976_v29, %v946_v58 }
 0x1eb   : > { %v922_v3 = vpop.permute.xlu0 %921  ;;  %v950_v34 = vpop.permute.xlu1 %949 }
 0x1ec   : > { %v969_v38 = vsel %vm968_vm4, %v967_v6, %v922_v3  ;;  %v978_v44 = vsel %vm968_vm4, %v977_v37, %v950_v34 }
 0x1ed   : > { %v979_v49 = vsel %vm970_vm5, %v978_v44, %v954_v23  ;;  %v971_v40 = vsel %vm970_vm5, %v969_v38, %v926_v27 }
 0x1ef   : > { %v958_v48 = vpop.permute.xlu0 %957  ;;  %v930_v45 = vpop.permute.xlu1 %929 }
 0x1f0   : > { %v980_v33 = vsel %vm972_vm6, %v979_v49, %v958_v48  ;;  %v973_v39 = vsel %vm972_vm6, %v971_v40, %v930_v45 }
 0x1f1   : > { %v993_v42 = vrot.slane %v980_v33, %v1378_v13  ;;  %v989_v46 = vrot.slane %v973_v39, %v1378_v13  ;;  %v1014_v14 = vrot.slane %v980_v33, %v1363_v4  ;;  %v1010_v47 = vrot.slane %v973_v39, %v1363_v4 }
 0x1f2   : > { %v1026_v0 = vrot.slane %v973_v39, %v1366_v5  ;;  %v1030_v63 = vrot.slane %v980_v33, %v1366_v5  ;;  %v1042_v13 = vrot.slane %v973_v39, %v1399_v26  ;;  %v1046_v35 = vrot.slane %v980_v33, %v1399_v26 }
 0x1f3   : > { %v995_v12 = vmul.f32 %v993_v42, %v984_v55  ;;  %v994_v36 = vmul.f32 %v989_v46, %v984_v55  ;;  %v1015_v60 = vmul.f32 %v1010_v47, %v1005_v56  ;;  %v1016_v62 = vmul.f32 %v1014_v14, %v1005_v56 }
 0x1f5   : > { %v1001_v51 = vadd.f32 %v999_v43, %v994_v36  ;;  %v1002_v52 = vadd.f32 %v999_v43, %v995_v12 }
 0x1f7   : > { %v1017_v2 = vadd.f32 %v1015_v60, %v1001_v51  ;;  %v1018_v18 = vadd.f32 %v1016_v62, %v1002_v52 }
 0x200   : > { %v1037_v50 = vpop.permute.xlu0 %1036  ;;  %v1021_v1 = vpop.permute.xlu1 %1020 }
 0x201   : > { %v1031_v4 = vmul.f32 %v1026_v0, %v1021_v1  ;;  %v1032_v7 = vmul.f32 %v1030_v63, %v1021_v1  ;;  %v1047_v19 = vmul.f32 %v1042_v13, %v1037_v50  ;;  %v1048_v53 = vmul.f32 %v1046_v35, %v1037_v50 }
 0x203   : > { %v1033_v54 = vadd.f32 %v1031_v4, %v1017_v2  ;;  %v1034_v11 = vadd.f32 %v1032_v7, %v1018_v18 }
 0x205   : > { %v1049_v5 = vadd.f32 %v1047_v19, %v1033_v54  ;;  %v1050_v9 = vadd.f32 %v1048_v53, %v1034_v11 }
 0x207   : > { %1051 = vst [vmem:[%s190_s11] sm:$0xff] %v1049_v5  ;;  %1052 = vst [vmem:[%s190_s11 + $0x8] sm:$0xff] %v1050_v9 }
 0x208   : > { %1213 = shalt.err (!%p1210_p3)
}
 0x209   : > { %s1214_s29 = scalar_lea.hbm %s1646_s20, 256  ;;  %s1218_s6 = scalar_lea.hbm %s1694_s4, 512 }
 0x20a   : > { %p1215_p4 = scmp.ne.s32.totalorder %s1646_s20, %s1214_s29  ;;  %p1219_p9 = scmp.lt.u32.totalorder %s1646_s20, %s1694_s4 }
 0x20b   : > { %p1220_p10 = scmp.lt.u32.totalorder %s1218_s6, %s1214_s29  ;;  %p1222_p12 = scmp.lt.u32.totalorder %s1214_s29, %s1646_s20 }
 0x20c   : > { %p1216_p7 = pnand %p1215_p4, %p1344_p5 }
 0x20d   : > { %p1221_p11 = por %p1220_p10, %p1219_p9 }
 0x20e   : > { %p1217_p8 = pneg %p1216_p7 }
 0x20f   : > { %p1223_p13 = por %p1222_p12, %p1221_p11 }
 0x211   : > { %p1224_p0 = pnand %p1223_p13, %p1217_p8 }
 0x213   : > { %1227 = shalt.err (!%p1224_p0)
}
 0x214   : > { %1140 = dma.vmem_to_hbm [thread:$0]  (%p1344_p5), %s1648_s12, 256, %s1646_s20, %s1054_s19  }
 0x215 PF: > { %p1146_p1 = scmp.ge.s32.totalorder %s1262_s18, 2  ;;  %s1080_s9 = sand.u32 1, %s1250_s15  }
 0x216   : > { %s1081_s10 = scalar_lea.sflag [#allocation3], %s1080_s9 }
 0x217   : > { %p1143_p2 = pnand %p1146_p1, %p1348_p6 }
 0x219   : > { %1245 = dma.done.wait (!%p1143_p2), %s1081_s10, 256  }
 0x21a   : > { %1247 = vsyncadd (!%p1143_p2), %s1081_s10, 4294967040  ;;  %p14_p3 = scmp.ge.s32.totalorder %s1331_s21, 4   ;;  %s1697_s15 = smov %s1254_s16 }
 0x21b   : > { %s1698_s16 = smov %s1258_s17  ;;  %s1699_s17 = smov %s1342_s24 }
 0x21c   : > { %s1700_s18 = smov %s1331_s21  ;;  %16 = sbr.rel (!%p14_p3) target bundleno = 3 (0x3), region = 71 }
 0x223   :  { %1086 = vsyncpa [#allocation3], 1 }
 0x224   :  { %1088 = vsyncpa [#allocation3 + $0x1], 1 }

</bundles_post_ra>
